<compile_context>
chip_gen: v6e
topology: v6e:2x2x1
jax: 0.10.0
libtpu: 0.0.40
codegen_flags: <defaults>
</compile_context>

<pallas_src>
import jax
import jax.numpy as jnp
from jax.experimental import pallas as pl
from jax.experimental.pallas import tpu as pltpu

BN_EPS = 1e-5


def bilinear_matrix(out_size, in_size):
    """M (out_size, in_size) s.t. out = M @ in reproduces PyTorch bilinear interpolation
    (align_corners=False) along one axis."""
    scale = in_size / out_size
    i = jnp.arange(out_size, dtype=jnp.float32)
    src = jnp.maximum((i + 0.5) * scale - 0.5, 0.0)
    i0 = jnp.clip(jnp.floor(src).astype(jnp.int32), 0, in_size - 1)
    i1 = jnp.minimum(i0 + 1, in_size - 1)
    l1 = src - i0.astype(jnp.float32)
    l0 = 1.0 - l1
    rows = jnp.arange(out_size)
    m = jnp.zeros((out_size, in_size), jnp.float32)
    m = m.at[rows, i0].add(l0)
    m = m.at[rows, i1].add(l1)
    return m


def make_fused_kernel(n_batch, n_chan, height, width):
    """Fused residual-block + separable bilinear-x2 kernel.

    Refs (all VMEM, full-array blocks, single grid step):
      x_ref    : (B=N*C, H*W)    input, row (n*C+c) = image (n,c) flattened (lane-dense)
      pk_ref   : (B, 3)          per-row [gamma, beta, conv_bias]
      g_ref    : (B, B)          per-channel group-MEAN matrix (1/(N*H*W) folded in)
      wblk_ref : (B, B)          kron(I_N, conv_w): block-diagonal 1x1-conv mixing matrix
      uwT_ref  : (W, 2W)         Uw^T, x2 bilinear along W
      mh_ref   : (B*2H, H*B)     Mh[b*2H+p, h*B+b'] = (b==b') * Uh[p,h]  (H upsample + row
                                 reorder from the bridge's (h,b) order to output (b,p) order)
      o_ref    : (B*2H, 2W)      output; wrapper reshape to (N,C,2H,2W) is free
    """
    N, C, H, W = n_batch, n_chan, height, width
    B = N * C

    def kernel(x_ref, pk_ref, g_ref, wblk_ref, uwT_ref, mh_ref, o_ref):
        x0 = x_ref[...]                      # (B, HW) f32
        pk = pk_ref[...]                     # (B, 3)
        gamma = pk[:, 0:1]
        beta = pk[:, 1:2]
        bias = pk[:, 2:3]
        gmat = g_ref[...]                    # (B, B)
        wblk = wblk_ref[...]                 # (B, B)

        h = x0
        for _ in range(3):                   # shared BN + shared 1x1 conv, static unroll
            # --- one-pass per-channel batch statistics (lane reduce + one tiny dot) ---
            s1 = jnp.sum(h, axis=1, keepdims=True)            # (B, 1) sum
            s2 = jnp.sum(h * h, axis=1, keepdims=True)        # (B, 1) sum of squares
            stats = jnp.dot(gmat, jnp.concatenate([s1, s2], axis=1),
                            preferred_element_type=jnp.float32)   # (B, 2) = [mean, E[x^2]]
            mean = stats[:, 0:1]
            var = jnp.maximum(stats[:, 1:2] - mean * mean, 0.0)   # biased batch variance
            # --- BN affine + ReLU (broadcast (B,1) columns over 256 lanes) ---
            scale = jax.lax.rsqrt(var + BN_EPS) * gamma
            hr = jnp.maximum((h - mean) * scale + beta, 0.0)
            # --- 1x1 conv: one MXU dot with the block-diagonal kron(I_N, W) weight ---
            h = jnp.dot(wblk, hr, preferred_element_type=jnp.float32) + bias

        res = h + x0                          # residual added once, (B, HW)

        # --- bridge (once, outside the loop): (B, H*W) -> (H*B, W), row = h*B + b.
        #     The (h,b) row order is compensated inside the precomputed Mh matrix.
        r2 = jnp.concatenate([res[:, i * W:(i + 1) * W] for i in range(H)], axis=0)

        # --- separable exact x2 bilinear upsample: W axis, then H axis (+ row reorder) ---
        t1 = jnp.dot(r2, uwT_ref[...], preferred_element_type=jnp.float32)      # (H*B, 2W)
        o_ref[...] = jnp.dot(mh_ref[...], t1, preferred_element_type=jnp.float32)  # (B*2H, 2W)

    return kernel


def mask_branch_forward(x_nchw, params):
    N, C, H, W = x_nchw.shape
    HW = H * W
    OH, OW = 2 * H, 2 * W
    B = N * C

    # Free, contiguity-preserving reshape: NCHW -> (N*C, H*W). No transposes anywhere.
    x2d = x_nchw.reshape(B, HW).astype(jnp.float32)

    gamma = params["gamma"].reshape(C).astype(jnp.float32)
    beta = params["beta"].reshape(C).astype(jnp.float32)
    conv_w = params["conv_w"].reshape(C, C).astype(jnp.float32)   # [c_out, c_in]
    conv_b = params["conv_b"].reshape(C).astype(jnp.float32)

    # One packed per-row parameter array: columns [gamma, beta, conv_bias]  (B, 3).
    pk = jnp.stack([jnp.tile(gamma, N), jnp.tile(beta, N), jnp.tile(conv_b, N)], axis=1)

    # Per-channel group-MEAN matrix: G[i,j] = 1/(N*H*W) if rows i,j share a channel.
    rows = jnp.arange(B)
    gmat = ((rows[:, None] % C) == (rows[None, :] % C)).astype(jnp.float32) / float(N * HW)

    # Block-diagonal 1x1-conv mixing matrix: kron(I_N, conv_w), shape (B, B).
    wblk = jnp.kron(jnp.eye(N, dtype=jnp.float32), conv_w)

    # Separable x2 bilinear factors.
    uw = bilinear_matrix(OW, W)                    # (OW, W)
    uh = bilinear_matrix(OH, H)                    # (OH, H)
    uwT = uw.T                                     # (W, OW)
    # Mh: H-axis upsample with the bridge's (h,b) row order mapped to output (b,p) rows.
    # Mh[b*OH + p, h*B + b'] = (b == b') * Uh[p, h]   -> (B*OH, H*B), ~128 KB at this size.
    mh = jnp.einsum("bc,ph->bphc", jnp.eye(B, dtype=jnp.float32), uh).reshape(B * OH, H * B)

    vmem = pl.BlockSpec(memory_space=pltpu.MemorySpace.VMEM)

    out2d = pl.pallas_call(
        make_fused_kernel(N, C, H, W),
        out_shape=jax.ShapeDtypeStruct((B * OH, OW), jnp.float32),
        in_specs=[vmem, vmem, vmem, vmem, vmem, vmem],
        out_specs=vmem,
    )(x2d, pk, gmat, wblk, uwT, mh)

    # Free row-major regrouping back to NCHW at 2x resolution.
    return out2d.reshape(N, C, OH, OW)


def reference_forward(x, params):
    """Pure-jnp reference matching the PyTorch module (training-mode BN)."""
    N, C, H, W = x.shape
    g = params["gamma"].reshape(1, C, 1, 1)
    b = params["beta"].reshape(1, C, 1, 1)
    w = params["conv_w"].reshape(C, C)
    cb = params["conv_b"].reshape(1, C, 1, 1)
    h = x
    for _ in range(3):
        mean = jnp.mean(h, axis=(0, 2, 3), keepdims=True)
        var = jnp.mean(jnp.square(h - mean), axis=(0, 2, 3), keepdims=True)
        hn = (h - mean) * jax.lax.rsqrt(var + BN_EPS) * g + b
        hr = jnp.maximum(hn, 0.0)
        h = jnp.einsum("oc,nchw->nohw", w, hr) + cb
    r = h + x
    uh = bilinear_matrix(2 * H, H)
    uw = bilinear_matrix(2 * W, W)
    return jnp.einsum("ph,nchw,qw->ncpq", uh, r, uw)


if __name__ == "__main__":
    key = jax.random.PRNGKey(0)
    N, C, H, W = 2, 4, 16, 16
    kx, kg, kb, kw, kc = jax.random.split(key, 5)

    x = jax.random.normal(kx, (N, C, H, W), jnp.float32)
    params = {
        # deterministic synthetic parameters (BN affine + 1x1 conv weight/bias)
        "gamma": 1.0 + 0.1 * jax.random.normal(kg, (C,), jnp.float32),
        "beta": 0.1 * jax.random.normal(kb, (C,), jnp.float32),
        "conv_w": 0.1 * jax.random.normal(kw, (C, C, 1, 1), jnp.float32),
        "conv_b": 0.1 * jax.random.normal(kc, (C,), jnp.float32),
    }

    out = jax.jit(mask_branch_forward)(x, params)
    jax.block_until_ready(out)
    assert out.shape == (N, C, 2 * H, 2 * W), out.shape
    assert out.dtype == jnp.float32

    ref = reference_forward(x, params)
    max_err = float(jnp.max(jnp.abs(out - ref)))
    assert max_err < 1e-3, f"max abs err vs reference: {max_err}"
    print("KERNEL_OK")
</pallas_src>

<mosaic_0001>
module attributes {stable_mosaic.version = 11 : i64} {
  func.func private @main(%arg0: i32) attributes {dimension_semantics = [#tpu.dimension_semantics<core_parallel>], iteration_bounds = array<i64: 2>, tpu.core_type = #tpu.core_type<sc_scalar_subcore>, window_params = []} {
    return
  }
}

module attributes {stable_mosaic.version = 11 : i64} {
  func.func private @main(%arg0: i32) attributes {dimension_semantics = [#tpu.dimension_semantics<core_parallel>], iteration_bounds = array<i64: 2>, tpu.core_type = #tpu.core_type<sc_scalar_subcore>, window_params = []} {
    return
  }
}

module attributes {stable_mosaic.version = 11 : i64} {
  func.func @kernel(%arg0: memref<8x256xf32, #tpu.memory_space<vmem>>, %arg1: memref<8x3xf32, #tpu.memory_space<vmem>>, %arg2: memref<8x8xf32, #tpu.memory_space<vmem>>, %arg3: memref<8x8xf32, #tpu.memory_space<vmem>>, %arg4: memref<16x32xf32, #tpu.memory_space<vmem>>, %arg5: memref<256x128xf32, #tpu.memory_space<vmem>>, %arg6: memref<256x32xf32, #tpu.memory_space<vmem>>) attributes {dimension_semantics = [], scalar_prefetch = 0 : i64, scratch_operands = 0 : i64, tpu.core_type = #tpu.core_type<tc>} {
    %c0 = arith.constant 0 : index
    %c0_0 = arith.constant 0 : index
    %0 = vector.load %arg0[%c0, %c0_0] : memref<8x256xf32, #tpu.memory_space<vmem>>, vector<8x256xf32>
    %c0_1 = arith.constant 0 : index
    %c0_2 = arith.constant 0 : index
    %1 = vector.load %arg1[%c0_1, %c0_2] : memref<8x3xf32, #tpu.memory_space<vmem>>, vector<8x3xf32>
    %2 = vector.extract_strided_slice %1 {offsets = [0, 0], sizes = [8, 1], strides = [1, 1]} : vector<8x3xf32> to vector<8x1xf32>
    %3 = vector.extract_strided_slice %1 {offsets = [0, 1], sizes = [8, 1], strides = [1, 1]} : vector<8x3xf32> to vector<8x1xf32>
    %4 = vector.extract_strided_slice %1 {offsets = [0, 2], sizes = [8, 1], strides = [1, 1]} : vector<8x3xf32> to vector<8x1xf32>
    %c0_3 = arith.constant 0 : index
    %c0_4 = arith.constant 0 : index
    %5 = vector.load %arg2[%c0_3, %c0_4] : memref<8x8xf32, #tpu.memory_space<vmem>>, vector<8x8xf32>
    %c0_5 = arith.constant 0 : index
    %c0_6 = arith.constant 0 : index
    %6 = vector.load %arg3[%c0_5, %c0_6] : memref<8x8xf32, #tpu.memory_space<vmem>>, vector<8x8xf32>
    %cst = arith.constant dense<0.000000e+00> : vector<8xf32>
    %7 = vector.multi_reduction <add>, %0, %cst [1] : vector<8x256xf32> to vector<8xf32>
    %8 = vector.shape_cast %7 : vector<8xf32> to vector<8x1xf32>
    %9 = arith.mulf %0, %0 : vector<8x256xf32>
    %cst_7 = arith.constant dense<0.000000e+00> : vector<8xf32>
    %10 = vector.multi_reduction <add>, %9, %cst_7 [1] : vector<8x256xf32> to vector<8xf32>
    %11 = vector.shape_cast %10 : vector<8xf32> to vector<8x1xf32>
    %12 = tpu.concatenate %8, %11 in 1 : vector<8x1xf32>, vector<8x1xf32> -> vector<8x2xf32>
    %cst_8 = arith.constant dense<0.000000e+00> : vector<8x2xf32>
    %13 = tpu.matmul %5, %12, %cst_8 {dimension_numbers = #tpu.dot_dimension_numbers<[1], [0], [0], [1], [0, 0, 1, 1], [], []>} : vector<8x8xf32>, vector<8x2xf32>, vector<8x2xf32> -> vector<8x2xf32>
    %14 = vector.extract_strided_slice %13 {offsets = [0, 0], sizes = [8, 1], strides = [1, 1]} : vector<8x2xf32> to vector<8x1xf32>
    %15 = vector.extract_strided_slice %13 {offsets = [0, 1], sizes = [8, 1], strides = [1, 1]} : vector<8x2xf32> to vector<8x1xf32>
    %16 = arith.mulf %14, %14 : vector<8x1xf32>
    %17 = arith.subf %15, %16 : vector<8x1xf32>
    %cst_9 = arith.constant 0.000000e+00 : f32
    %18 = vector.broadcast %cst_9 : f32 to vector<8x1xf32>
    %19 = arith.maximumf %17, %18 : vector<8x1xf32>
    %cst_10 = arith.constant 9.99999974E-6 : f32
    %20 = vector.broadcast %cst_10 : f32 to vector<8x1xf32>
    %21 = arith.addf %19, %20 : vector<8x1xf32>
    %22 = math.rsqrt %21 : vector<8x1xf32>
    %23 = arith.mulf %22, %2 : vector<8x1xf32>
    %24 = vector.broadcast %14 : vector<8x1xf32> to vector<8x256xf32>
    %25 = arith.subf %0, %24 : vector<8x256xf32>
    %26 = vector.broadcast %23 : vector<8x1xf32> to vector<8x256xf32>
    %27 = arith.mulf %25, %26 : vector<8x256xf32>
    %28 = vector.broadcast %3 : vector<8x1xf32> to vector<8x256xf32>
    %29 = arith.addf %27, %28 : vector<8x256xf32>
    %cst_11 = arith.constant 0.000000e+00 : f32
    %30 = vector.broadcast %cst_11 : f32 to vector<8x256xf32>
    %31 = arith.maximumf %29, %30 : vector<8x256xf32>
    %cst_12 = arith.constant dense<0.000000e+00> : vector<8x256xf32>
    %32 = tpu.matmul %6, %31, %cst_12 {dimension_numbers = #tpu.dot_dimension_numbers<[1], [0], [0], [1], [0, 0, 1, 1], [], []>} : vector<8x8xf32>, vector<8x256xf32>, vector<8x256xf32> -> vector<8x256xf32>
    %33 = vector.broadcast %4 : vector<8x1xf32> to vector<8x256xf32>
    %34 = arith.addf %32, %33 : vector<8x256xf32>
    %cst_13 = arith.constant dense<0.000000e+00> : vector<8xf32>
    %35 = vector.multi_reduction <add>, %34, %cst_13 [1] : vector<8x256xf32> to vector<8xf32>
    %36 = vector.shape_cast %35 : vector<8xf32> to vector<8x1xf32>
    %37 = arith.mulf %34, %34 : vector<8x256xf32>
    %cst_14 = arith.constant dense<0.000000e+00> : vector<8xf32>
    %38 = vector.multi_reduction <add>, %37, %cst_14 [1] : vector<8x256xf32> to vector<8xf32>
    %39 = vector.shape_cast %38 : vector<8xf32> to vector<8x1xf32>
    %40 = tpu.concatenate %36, %39 in 1 : vector<8x1xf32>, vector<8x1xf32> -> vector<8x2xf32>
    %cst_15 = arith.constant dense<0.000000e+00> : vector<8x2xf32>
    %41 = tpu.matmul %5, %40, %cst_15 {dimension_numbers = #tpu.dot_dimension_numbers<[1], [0], [0], [1], [0, 0, 1, 1], [], []>} : vector<8x8xf32>, vector<8x2xf32>, vector<8x2xf32> -> vector<8x2xf32>
    %42 = vector.extract_strided_slice %41 {offsets = [0, 0], sizes = [8, 1], strides = [1, 1]} : vector<8x2xf32> to vector<8x1xf32>
    %43 = vector.extract_strided_slice %41 {offsets = [0, 1], sizes = [8, 1], strides = [1, 1]} : vector<8x2xf32> to vector<8x1xf32>
    %44 = arith.mulf %42, %42 : vector<8x1xf32>
    %45 = arith.subf %43, %44 : vector<8x1xf32>
    %cst_16 = arith.constant 0.000000e+00 : f32
    %46 = vector.broadcast %cst_16 : f32 to vector<8x1xf32>
    %47 = arith.maximumf %45, %46 : vector<8x1xf32>
    %cst_17 = arith.constant 9.99999974E-6 : f32
    %48 = vector.broadcast %cst_17 : f32 to vector<8x1xf32>
    %49 = arith.addf %47, %48 : vector<8x1xf32>
    %50 = math.rsqrt %49 : vector<8x1xf32>
    %51 = arith.mulf %50, %2 : vector<8x1xf32>
    %52 = vector.broadcast %42 : vector<8x1xf32> to vector<8x256xf32>
    %53 = arith.subf %34, %52 : vector<8x256xf32>
    %54 = vector.broadcast %51 : vector<8x1xf32> to vector<8x256xf32>
    %55 = arith.mulf %53, %54 : vector<8x256xf32>
    %56 = vector.broadcast %3 : vector<8x1xf32> to vector<8x256xf32>
    %57 = arith.addf %55, %56 : vector<8x256xf32>
    %cst_18 = arith.constant 0.000000e+00 : f32
    %58 = vector.broadcast %cst_18 : f32 to vector<8x256xf32>
    %59 = arith.maximumf %57, %58 : vector<8x256xf32>
    %cst_19 = arith.constant dense<0.000000e+00> : vector<8x256xf32>
    %60 = tpu.matmul %6, %59, %cst_19 {dimension_numbers = #tpu.dot_dimension_numbers<[1], [0], [0], [1], [0, 0, 1, 1], [], []>} : vector<8x8xf32>, vector<8x256xf32>, vector<8x256xf32> -> vector<8x256xf32>
    %61 = vector.broadcast %4 : vector<8x1xf32> to vector<8x256xf32>
    %62 = arith.addf %60, %61 : vector<8x256xf32>
    %cst_20 = arith.constant dense<0.000000e+00> : vector<8xf32>
    %63 = vector.multi_reduction <add>, %62, %cst_20 [1] : vector<8x256xf32> to vector<8xf32>
    %64 = vector.shape_cast %63 : vector<8xf32> to vector<8x1xf32>
    %65 = arith.mulf %62, %62 : vector<8x256xf32>
    %cst_21 = arith.constant dense<0.000000e+00> : vector<8xf32>
    %66 = vector.multi_reduction <add>, %65, %cst_21 [1] : vector<8x256xf32> to vector<8xf32>
    %67 = vector.shape_cast %66 : vector<8xf32> to vector<8x1xf32>
    %68 = tpu.concatenate %64, %67 in 1 : vector<8x1xf32>, vector<8x1xf32> -> vector<8x2xf32>
    %cst_22 = arith.constant dense<0.000000e+00> : vector<8x2xf32>
    %69 = tpu.matmul %5, %68, %cst_22 {dimension_numbers = #tpu.dot_dimension_numbers<[1], [0], [0], [1], [0, 0, 1, 1], [], []>} : vector<8x8xf32>, vector<8x2xf32>, vector<8x2xf32> -> vector<8x2xf32>
    %70 = vector.extract_strided_slice %69 {offsets = [0, 0], sizes = [8, 1], strides = [1, 1]} : vector<8x2xf32> to vector<8x1xf32>
    %71 = vector.extract_strided_slice %69 {offsets = [0, 1], sizes = [8, 1], strides = [1, 1]} : vector<8x2xf32> to vector<8x1xf32>
    %72 = arith.mulf %70, %70 : vector<8x1xf32>
    %73 = arith.subf %71, %72 : vector<8x1xf32>
    %cst_23 = arith.constant 0.000000e+00 : f32
    %74 = vector.broadcast %cst_23 : f32 to vector<8x1xf32>
    %75 = arith.maximumf %73, %74 : vector<8x1xf32>
    %cst_24 = arith.constant 9.99999974E-6 : f32
    %76 = vector.broadcast %cst_24 : f32 to vector<8x1xf32>
    %77 = arith.addf %75, %76 : vector<8x1xf32>
    %78 = math.rsqrt %77 : vector<8x1xf32>
    %79 = arith.mulf %78, %2 : vector<8x1xf32>
    %80 = vector.broadcast %70 : vector<8x1xf32> to vector<8x256xf32>
    %81 = arith.subf %62, %80 : vector<8x256xf32>
    %82 = vector.broadcast %79 : vector<8x1xf32> to vector<8x256xf32>
    %83 = arith.mulf %81, %82 : vector<8x256xf32>
    %84 = vector.broadcast %3 : vector<8x1xf32> to vector<8x256xf32>
    %85 = arith.addf %83, %84 : vector<8x256xf32>
    %cst_25 = arith.constant 0.000000e+00 : f32
    %86 = vector.broadcast %cst_25 : f32 to vector<8x256xf32>
    %87 = arith.maximumf %85, %86 : vector<8x256xf32>
    %cst_26 = arith.constant dense<0.000000e+00> : vector<8x256xf32>
    %88 = tpu.matmul %6, %87, %cst_26 {dimension_numbers = #tpu.dot_dimension_numbers<[1], [0], [0], [1], [0, 0, 1, 1], [], []>} : vector<8x8xf32>, vector<8x256xf32>, vector<8x256xf32> -> vector<8x256xf32>
    %89 = vector.broadcast %4 : vector<8x1xf32> to vector<8x256xf32>
    %90 = arith.addf %88, %89 : vector<8x256xf32>
    %91 = arith.addf %90, %0 : vector<8x256xf32>
    %92 = vector.extract_strided_slice %91 {offsets = [0, 0], sizes = [8, 16], strides = [1, 1]} : vector<8x256xf32> to vector<8x16xf32>
    %93 = vector.extract_strided_slice %91 {offsets = [0, 16], sizes = [8, 16], strides = [1, 1]} : vector<8x256xf32> to vector<8x16xf32>
    %94 = vector.extract_strided_slice %91 {offsets = [0, 32], sizes = [8, 16], strides = [1, 1]} : vector<8x256xf32> to vector<8x16xf32>
    %95 = vector.extract_strided_slice %91 {offsets = [0, 48], sizes = [8, 16], strides = [1, 1]} : vector<8x256xf32> to vector<8x16xf32>
    %96 = vector.extract_strided_slice %91 {offsets = [0, 64], sizes = [8, 16], strides = [1, 1]} : vector<8x256xf32> to vector<8x16xf32>
    %97 = vector.extract_strided_slice %91 {offsets = [0, 80], sizes = [8, 16], strides = [1, 1]} : vector<8x256xf32> to vector<8x16xf32>
    %98 = vector.extract_strided_slice %91 {offsets = [0, 96], sizes = [8, 16], strides = [1, 1]} : vector<8x256xf32> to vector<8x16xf32>
    %99 = vector.extract_strided_slice %91 {offsets = [0, 112], sizes = [8, 16], strides = [1, 1]} : vector<8x256xf32> to vector<8x16xf32>
    %100 = vector.extract_strided_slice %91 {offsets = [0, 128], sizes = [8, 16], strides = [1, 1]} : vector<8x256xf32> to vector<8x16xf32>
    %101 = vector.extract_strided_slice %91 {offsets = [0, 144], sizes = [8, 16], strides = [1, 1]} : vector<8x256xf32> to vector<8x16xf32>
    %102 = vector.extract_strided_slice %91 {offsets = [0, 160], sizes = [8, 16], strides = [1, 1]} : vector<8x256xf32> to vector<8x16xf32>
    %103 = vector.extract_strided_slice %91 {offsets = [0, 176], sizes = [8, 16], strides = [1, 1]} : vector<8x256xf32> to vector<8x16xf32>
    %104 = vector.extract_strided_slice %91 {offsets = [0, 192], sizes = [8, 16], strides = [1, 1]} : vector<8x256xf32> to vector<8x16xf32>
    %105 = vector.extract_strided_slice %91 {offsets = [0, 208], sizes = [8, 16], strides = [1, 1]} : vector<8x256xf32> to vector<8x16xf32>
    %106 = vector.extract_strided_slice %91 {offsets = [0, 224], sizes = [8, 16], strides = [1, 1]} : vector<8x256xf32> to vector<8x16xf32>
    %107 = vector.extract_strided_slice %91 {offsets = [0, 240], sizes = [8, 16], strides = [1, 1]} : vector<8x256xf32> to vector<8x16xf32>
    %108 = tpu.concatenate %92, %93, %94, %95, %96, %97, %98, %99, %100, %101, %102, %103, %104, %105, %106, %107 in 0 : vector<8x16xf32>, vector<8x16xf32>, vector<8x16xf32>, vector<8x16xf32>, vector<8x16xf32>, vector<8x16xf32>, vector<8x16xf32>, vector<8x16xf32>, vector<8x16xf32>, vector<8x16xf32>, vector<8x16xf32>, vector<8x16xf32>, vector<8x16xf32>, vector<8x16xf32>, vector<8x16xf32>, vector<8x16xf32> -> vector<128x16xf32>
    %c0_27 = arith.constant 0 : index
    %c0_28 = arith.constant 0 : index
    %109 = vector.load %arg4[%c0_27, %c0_28] : memref<16x32xf32, #tpu.memory_space<vmem>>, vector<16x32xf32>
    %cst_29 = arith.constant dense<0.000000e+00> : vector<128x32xf32>
    %110 = tpu.matmul %108, %109, %cst_29 {dimension_numbers = #tpu.dot_dimension_numbers<[1], [0], [0], [1], [0, 0, 1, 1], [], []>} : vector<128x16xf32>, vector<16x32xf32>, vector<128x32xf32> -> vector<128x32xf32>
    %c0_30 = arith.constant 0 : index
    %c0_31 = arith.constant 0 : index
    %111 = vector.load %arg5[%c0_30, %c0_31] : memref<256x128xf32, #tpu.memory_space<vmem>>, vector<256x128xf32>
    %cst_32 = arith.constant dense<0.000000e+00> : vector<256x32xf32>
    %112 = tpu.matmul %111, %110, %cst_32 {dimension_numbers = #tpu.dot_dimension_numbers<[1], [0], [0], [1], [0, 0, 1, 1], [], []>} : vector<256x128xf32>, vector<128x32xf32>, vector<256x32xf32> -> vector<256x32xf32>
    %c0_33 = arith.constant 0 : index
    %c0_34 = arith.constant 0 : index
    %113 = vector.load %arg6[%c0_33, %c0_34] : memref<256x32xf32, #tpu.memory_space<vmem>>, vector<256x32xf32>
    tpu.vector_store %arg6[%c0_33, %c0_34], %112 {strides = array<i32>} : memref<256x32xf32, #tpu.memory_space<vmem>>, vector<256x32xf32>,
    return
  }
}

</mosaic_0001>

<bundles_post_ra>
// kernel: tile.18
= control target key start
LH: loop header
LB: loop body
LE: loop exit
PB: predicated region body
PF: predicated region fallthrough
CT: control target
= control target key end

     0   :  { %s22_s0 = inlined_call_operand.vmem [shape: f32[4], index: 0, kind: input, shape index: {}]   ;;  %s23_s1 = inlined_call_operand.vmem [shape: f32[2,4], index: 1, kind: output, shape index: {}]  }
   0x1   :  { %v4_v0 = vld [vmem:[%s22_s0] ss:$0 sm:$0xff] }
   0x2   :  { %5 = vst [vmem:[%s23_s1] sm:$0x3] %v4_v0 }

// kernel: tile.0
= control target key start
LH: loop header
LB: loop body
LE: loop exit
PB: predicated region body
PF: predicated region fallthrough
CT: control target
= control target key end

     0   :  { %s35_s8 = smov 125   ;;  %vm8_vm0 = vcmask 7168   ;;  %s36_s11 = smov 126   ;;  %s62_s0 = inlined_call_operand.vmem [shape: f32[2,4], index: 0, kind: input, shape index: {}]   ;;  %s63_s1 = inlined_call_operand.vmem [shape: f32[8,1], index: 1, kind: output, shape index: {}]  }
   0x1   :  { %v5_v0 = vld [vmem:[%s62_s0] sm:$0x3]  ;;  %s34_s0 = smov 127  }
   0x2   :  { %6 = vst [vmem:[#allocation0] sm:$0x3] %v5_v0 }
   0x9   :  { %v10_v1 = vld [vmem:[#allocation0] sm:$0x3]  }
   0xa   :  { %v22_v2 = vld [vmem:[#allocation0] sm:$0x3]   ;;  %11 = vrot.lane.b32.xlu0 %v10_v1, %s34_s0 }
   0xb   :  { %23 = vrot.lane.b32.xlu1 %v22_v2, %s35_s8  ;;  %v7_v3 = vld [vmem:[#allocation0] sm:$0x3]  }
   0xc   :  { %v16_v4 = vld [vmem:[#allocation0] sm:$0x3]   ;;  %9 = vst.msk [vmem:[%s63_s1] ss:$4 sm:$0x3] %vm8_vm0, %v7_v3  }
   0xe   :  { %17 = vrot.lane.b32.xlu0 %v16_v4, %s36_s11 }
  0x7c   :  { %v12_v5 = vpop.permute.xlu0 %11  }
  0x7d   :  { %v24_v6 = vpop.permute.xlu1 %23   ;;  %28 = vst.msk [vmem:[%s63_s1 + $0x1] ss:$4 sm:$0x3] %vm8_vm0, %v12_v5  }
  0x7e   :  { %30 = vst.msk [vmem:[%s63_s1 + $0x3] ss:$4 sm:$0x3] %vm8_vm0, %v24_v6  }
  0x80   :  { %v18_v7 = vpop.permute.xlu0 %17  }
  0x81   :  { %29 = vst.msk [vmem:[%s63_s1 + $0x2] ss:$4 sm:$0x3] %vm8_vm0, %v18_v7  }

// kernel: mask_branch_forward.1
= control target key start
LH: loop header
LB: loop body
LE: loop exit
PB: predicated region body
PF: predicated region fallthrough
CT: control target
= control target key end

     0   :  { %s1716_s0 = inlined_call_operand.vmem [shape: f32[8,256], index: 0, kind: input, shape index: {}]   ;;  %s1717_s1 = inlined_call_operand.vmem [shape: f32[8,3], index: 1, kind: input, shape index: {}]   ;;  %s1718_s2 = inlined_call_operand.vmem [shape: f32[8,8], index: 2, kind: input, shape index: {}]   ;;  %s1719_s3 = inlined_call_operand.vmem [shape: f32[8,8], index: 3, kind: input, shape index: {}]   ;;  %s1720_s4 = inlined_call_operand.vmem [shape: f32[16,32], index: 4, kind: input, shape index: {}]   ;;  %s1721_s5 = inlined_call_operand.vmem [shape: f32[256,128], index: 5, kind: input, shape index: {}]   ;;  %s1722_s6 = inlined_call_operand.hbm [shape: f32[256,32], index: 6, kind: output, shape index: {}]  }
   0x1   :  { %v1454_v0 = vld [vmem:[%s1716_s0] sm:$0xff]  ;;  %v1459_v1 = vld [vmem:[%s1716_s0 + $0x8] sm:$0xff] }
   0x2   :  { %11 = vsyncpa [#allocation3], 0  ;;  %v29_v2 = vadd.f32 %v1459_v1, %v1454_v0  ;;  %v32_v3 = vmul.f32 %v1454_v0, %v1454_v0  ;;  %v33_v4 = vmul.f32 %v1459_v1, %v1459_v1  ;;  %v1400_v6 = vmov 0.0   ;;  %v1474_v10 = vld [vmem:[%s1718_s2] sm:$0xff]  ;;  %s1403_s26 = smov 1   ;;  %s1406_s8 = smov 96  }
   0x3   :  { %1195 = vmatprep.subr.mxu0 %v1400_v6  ;;  %220 = vmatprep.mubr.f32.mxu1 %v1400_v6  ;;  %vm1401_vm0 = vmmov 0   ;;  %v1402_v7 = vmov 0   ;;  %vm37_vm1 = vcmask 7168   ;;  %vm39_vm2 = vcmask 64512   ;;  %v26_v15 = vld [vmem:[%s1717_s1] sm:$0xff]  ;;  %s1407_s9 = smov 112  }
   0x4   :  { %30 = vadd.xlane.f32.xlu0 %v29_v2  ;;  %v34_v5 = vadd.f32 %v33_v4, %v32_v3  ;;  %1197 = vmatprep.mubr.msk.f32.mxu0 %vm1401_vm0, %v1400_v6  ;;  %v1404_v16 = vmov 1   ;;  %v1405_v24 = vmov 2   ;;  %v1500_v36 = vld [vmem:[%s1719_s3] sm:$0xff]  ;;  %vm617_vm3 = vcmask 130048   ;;  %s1409_s10 = smov 32   ;;  %s1410_s11 = smov 64  }
   0x5   :  { %1366 = vset.pattern.permute.xlu0 %v1402_v7  ;;  %1367 = vset.pattern.permute.xlu1 %v1404_v16  ;;  %s1411_s12 = smov 48   ;;  %s1412_s13 = smov 16   ;;  %vm1052_vm4 = vcmask 261120  }
   0x8   :  { %35 = vadd.xlane.f32.xlu0 %v34_v5 }
  0x8d   :  { %v31_v8 = vpop.xlane.xlu0 %30 }
  0x91   :  { %v36_v9 = vpop.xlane.xlu0 %35 }
  0x92   :  { %v38_v11 = vsel %vm37_vm1, %v31_v8, %v36_v9 }
  0x93   :  { %1196 = vmatpush3.msra.mxu0 %v38_v11 }
  0x94   :  { %1198 = vmatmul.mubr.msk.f32.vlgmr.msra.gmra.mxu0 %vm39_vm2, %v1474_v10  ;;  %1200 = vmatprep.subr.mxu0 %v1400_v6 }
  0x95   :  { %1202 = vmatprep.mubr.msk.f32.mxu0 %vm1401_vm0, %v1400_v6 }
 0x154   :  { %v109_v12 = vpop.f32.mrf.mxu0 }
 0x155   :  { %129 = vperm.xlu0 %1366, %v109_v12   ;;  %v113_v13 = vmul.f32 %v109_v12, %v109_v12 }
 0x156   :  { %v1199_v14 = vpop.f32.mrf.mxu0 }
 0x157   :  { %115 = vrot.lane.b32.xlu1 %v113_v13, %s1403_s26 }
 0x15b   :  { %123 = vrot.lane.b32.xlu1 %v26_v15, %s1403_s26 }
 0x1c9   :  { %v116_v17 = vpop.permute.xlu1 %115 }
 0x1ca   :  { %v118_v18 = vsub.f32 %v109_v12, %v116_v17 }
 0x1cc   :  { %v119_v19 = vmax.f32 %v118_v18, 0.0 }
 0x1cd   :  { %v1488_v21 = vpop.permute.xlu1 %123 }
 0x1ce   :  { %v120_v20 = vadd.f32 1e-05, %v119_v19 }
 0x1d0   :  { %1372 = vrsqrt.f32 %v120_v20  ;;  %v130_v25 = vpop.permute.xlu0 %129 }
 0x1d1   :  { %v132_v27 = vsub.f32 %v1454_v0, %v130_v25  ;;  %v133_v28 = vsub.f32 %v1459_v1, %v130_v25 }
 0x1dd   :  { %v1373_v22 = vpop.eup %1372 }
 0x1de   :  { %v126_v23 = vmul.f32 %v1373_v22, %v1488_v21 }
 0x1e0   :  { %136 = vperm.xlu1 %1367, %v126_v23  }
 0x1e4   :  { %142 = vperm.xlu1 %1367, %v26_v15  }
 0x1e8   :  { %1368 = vset.pattern.permute.xlu1 %v1405_v24 }
 0x1e9   :  { %150 = vperm.xlu1 %1368, %v26_v15  }
 0x1ed   :  { %1369 = vset.pattern.permute.xlu1 %v1402_v7 }
 0x25b   :  { %v137_v26 = vpop.permute.xlu1 %136 }
 0x25c   :  { %v139_v29 = vmul.f32 %v137_v26, %v132_v27  ;;  %v140_v30 = vmul.f32 %v137_v26, %v133_v28 }
 0x25f   :  { %v1493_v31 = vpop.permute.xlu1 %142 }
 0x260   :  { %v146_v32 = vadd.f32 %v1493_v31, %v140_v30  ;;  %v145_v33 = vadd.f32 %v1493_v31, %v139_v29 }
 0x262   :  { %v148_v34 = vmax.f32 %v146_v32, 0.0  ;;  %v147_v35 = vmax.f32 %v145_v33, 0.0 }
 0x264   :  { %186 = vmatprep.subr.mxu1 %v148_v34  ;;  %v1505_v37 = vpop.permute.xlu1 %150 }
 0x265   :  { %187 = vmatpush1.msra.mxu1 %v147_v35 }
 0x266   :  { %1102 = vmatmul.mubr.msk.f32.vlgmr.msra.gmra.mxu1 %vm39_vm2, %v1500_v36 }
 0x267   :  { %398 = vmatprep.mubr.f32.mxu1 %v1400_v6 }
 0x326   :  { %v222_v38 = vpop.f32.mrf.mxu1 }
 0x327   :  { %v223_v39 = vadd.f32 %v222_v38, %v1505_v37 }
 0x328   :  { %v224_v40 = vpop.f32.mrf.mxu1 }
 0x329   :  { %v225_v41 = vadd.f32 %v224_v40, %v1505_v37  ;;  %v230_v43 = vmul.f32 %v223_v39, %v223_v39  ;;  %v615_v40 = vld [vmem:[%s1720_s4] sm:$0xff] }
 0x32b   :  { %v227_v42 = vadd.f32 %v225_v41, %v223_v39  ;;  %v231_v44 = vmul.f32 %v225_v41, %v225_v41 }
 0x32d   :  { %228 = vadd.xlane.f32.xlu1 %v227_v42  ;;  %v232_v45 = vadd.f32 %v231_v44, %v230_v43 }
 0x32f   :  { %233 = vadd.xlane.f32.xlu0 %v232_v45 }
 0x3b6   :  { %v229_v46 = vpop.xlane.xlu1 %228 }
 0x3b8   :  { %v234_v47 = vpop.xlane.xlu0 %233 }
 0x3b9   :  { %v235_v48 = vsel %vm37_vm1, %v229_v46, %v234_v47 }
 0x3ba   :  { %1201 = vmatpush3.msra.mxu0 %v235_v48 }
 0x3bb   :  { %1203 = vmatmul.mubr.msk.f32.vlgmr.msra.gmra.mxu0 %vm39_vm2, %v1474_v10  ;;  %1205 = vmatprep.subr.mxu0 %v1400_v6 }
 0x3bc   :  { %1207 = vmatprep.mubr.msk.f32.mxu0 %vm1401_vm0, %v1400_v6 }
 0x47b   :  { %v302_v49 = vpop.f32.mrf.mxu0 }
 0x47c   :  { %v306_v50 = vmul.f32 %v302_v49, %v302_v49 }
 0x47d   :  { %v1204_v51 = vpop.f32.mrf.mxu0 }
 0x47e   :  { %308 = vrot.lane.b32.xlu1 %v306_v50, %s1403_s26 }
 0x482   :  { %318 = vperm.xlu1 %1369, %v302_v49  }
 0x486   :  { %1370 = vset.pattern.permute.xlu1 %v1404_v16 }
 0x4f0   :  { %v309_v52 = vpop.permute.xlu1 %308 }
 0x4f1   :  { %v311_v53 = vsub.f32 %v302_v49, %v309_v52 }
 0x4f3   :  { %v312_v54 = vmax.f32 %v311_v53, 0.0 }
 0x4f5   :  { %v313_v55 = vadd.f32 1e-05, %v312_v54 }
 0x4f7   :  { %1374 = vrsqrt.f32 %v313_v55 }
 0x4fd   :  { %v319_v58 = vpop.permute.xlu1 %318 }
 0x4fe   :  { %v321_v59 = vsub.f32 %v223_v39, %v319_v58  ;;  %v322_v60 = vsub.f32 %v225_v41, %v319_v58 }
 0x504   :  { %v1375_v56 = vpop.eup %1374 }
 0x505   :  { %v315_v57 = vmul.f32 %v1375_v56, %v1488_v21  ;;  %v809_v56 = vld [vmem:[%s1721_s5 + $0x70] sm:$0xff] }
 0x507   :  { %325 = vperm.xlu1 %1370, %v315_v57   ;;  %v795_v57 = vld [vmem:[%s1721_s5] sm:$0xff] }
 0x582   :  { %v326_v61 = vpop.permute.xlu1 %325 }
 0x583   :  { %v328_v62 = vmul.f32 %v326_v61, %v321_v59  ;;  %v329_v63 = vmul.f32 %v326_v61, %v322_v60 }
 0x585   :  { %v330_v2 = vadd.f32 %v328_v62, %v1493_v31  ;;  %v331_v3 = vadd.f32 %v329_v63, %v1493_v31 }
 0x587   :  { %v332_v4 = vmax.f32 %v330_v2, 0.0  ;;  %v333_v5 = vmax.f32 %v331_v3, 0.0 }
 0x589   :  { %364 = vmatprep.subr.mxu1 %v333_v5 }
 0x58a   :  { %365 = vmatpush1.msra.mxu1 %v332_v4 }
 0x58b   :  { %1104 = vmatmul.mubr.msk.f32.vlgmr.msra.gmra.mxu1 %vm39_vm2, %v1500_v36 }
 0x58c   :  { %576 = vmatprep.mubr.f32.mxu1 %v1400_v6 }
 0x64b   :  { %v400_v7 = vpop.f32.mrf.mxu1 }
 0x64c   :  { %v401_v8 = vadd.f32 %v400_v7, %v1505_v37 }
 0x64d   :  { %v402_v9 = vpop.f32.mrf.mxu1 }
 0x64e   :  { %v403_v11 = vadd.f32 %v402_v9, %v1505_v37  ;;  %v408_v13 = vmul.f32 %v401_v8, %v401_v8 }
 0x650   :  { %v405_v12 = vadd.f32 %v403_v11, %v401_v8  ;;  %v409_v14 = vmul.f32 %v403_v11, %v403_v11 }
 0x652   :  { %406 = vadd.xlane.f32.xlu1 %v405_v12  ;;  %v410_v15 = vadd.f32 %v409_v14, %v408_v13  ;;  %v810_v14 = vld [vmem:[%s1721_s5 + $0x78] sm:$0xff] }
 0x654   :  { %411 = vadd.xlane.f32.xlu0 %v410_v15  ;;  %v796_v15 = vld [vmem:[%s1721_s5 + $0x8] sm:$0xff] }
 0x6db   :  { %v407_v17 = vpop.xlane.xlu1 %406 }
 0x6dd   :  { %v412_v18 = vpop.xlane.xlu0 %411 }
 0x6de   :  { %v413_v19 = vsel %vm37_vm1, %v407_v17, %v412_v18  ;;  %v811_v17 = vld [vmem:[%s1721_s5 + $0x80] sm:$0xff]  ;;  %v797_v18 = vld [vmem:[%s1721_s5 + $0x10] sm:$0xff] }
 0x6df   :  { %1206 = vmatpush3.msra.mxu0 %v413_v19  ;;  %v812_v19 = vld [vmem:[%s1721_s5 + $0x88] sm:$0xff] }
 0x6e0   :  { %1208 = vmatmul.mubr.msk.f32.vlgmr.msra.gmra.mxu0 %vm39_vm2, %v1474_v10 }
 0x7a0   :  { %v480_v6 = vpop.f32.mrf.mxu0 }
 0x7a1   :  { %v484_v20 = vmul.f32 %v480_v6, %v480_v6 }
 0x7a2   :  { %v1209_v22 = vpop.f32.mrf.mxu0 }
 0x7a3   :  { %486 = vrot.lane.b32.xlu0 %v484_v20, %s1403_s26  ;;  %v813_v20 = vld [vmem:[%s1721_s5 + $0x90] sm:$0xff]  ;;  %v799_v22 = vld [vmem:[%s1721_s5 + $0x20] sm:$0xff] }
 0x7a7   :  { %496 = vperm.xlu0 %1366, %v480_v6  }
 0x7ab   :  { %1371 = vset.pattern.permute.xlu0 %v1404_v16 }
 0x815   :  { %v487_v23 = vpop.permute.xlu0 %486 }
 0x816   :  { %v489_v24 = vsub.f32 %v480_v6, %v487_v23  ;;  %v798_v6 = vld [vmem:[%s1721_s5 + $0x18] sm:$0xff] }
 0x817   :  { %v814_v23 = vld [vmem:[%s1721_s5 + $0x98] sm:$0xff] }
 0x818   :  { %v490_v25 = vmax.f32 %v489_v24, 0.0  ;;  %v800_v24 = vld [vmem:[%s1721_s5 + $0x28] sm:$0xff] }
 0x81a   :  { %v491_v26 = vadd.f32 1e-05, %v490_v25  ;;  %v815_v25 = vld [vmem:[%s1721_s5 + $0xa0] sm:$0xff] }
 0x81c   :  { %1376 = vrsqrt.f32 %v491_v26  ;;  %v801_v26 = vld [vmem:[%s1721_s5 + $0x30] sm:$0xff] }
 0x822   :  { %v497_v29 = vpop.permute.xlu0 %496 }
 0x823   :  { %v499_v30 = vsub.f32 %v401_v8, %v497_v29  ;;  %v500_v10 = vsub.f32 %v403_v11, %v497_v29  ;;  %v817_v29 = vld [vmem:[%s1721_s5 + $0xb0] sm:$0xff] }
 0x829   :  { %v1377_v27 = vpop.eup %1376 }
 0x82a   :  { %v493_v28 = vmul.f32 %v1377_v27, %v1488_v21  ;;  %v616_v21 = vld [vmem:[%s1720_s4 + $0x8] sm:$0xff]  ;;  %s1408_s4 = smov 80  }
 0x82b   :  { %1210 = vmatprep.subr.mxu0 %v616_v21  ;;  %v816_v27 = vld [vmem:[%s1721_s5 + $0xa8] sm:$0xff] }
 0x82c   :  { %503 = vperm.xlu0 %1371, %v493_v28   ;;  %1211 = vmatpush3.msra.mxu0 %v616_v21  ;;  %v802_v28 = vld [vmem:[%s1721_s5 + $0x38] sm:$0xff] }
 0x82d   :  { %1212 = vmatprep.subr.mxu0 %v615_v40  ;;  %v822_v21 = vld [vmem:[%s1721_s5 + $0xd8] sm:$0xff] }
 0x82e   :  { %1213 = vmatpush3.msra.mxu0 %v615_v40  ;;  %v808_v40 = vld [vmem:[%s1721_s5 + $0x68] sm:$0xff] }
 0x8a7   :  { %v504_v32 = vpop.permute.xlu0 %503 }
 0x8a8   :  { %v506_v33 = vmul.f32 %v504_v32, %v499_v30  ;;  %v507_v34 = vmul.f32 %v504_v32, %v500_v10  ;;  %v803_v30 = vld [vmem:[%s1721_s5 + $0x40] sm:$0xff]  ;;  %v818_v10 = vld [vmem:[%s1721_s5 + $0xb8] sm:$0xff]  ;;  %v804_v32 = vld [vmem:[%s1721_s5 + $0x48] sm:$0xff] }
 0x8aa   :  { %v508_v35 = vadd.f32 %v506_v33, %v1493_v31  ;;  %v509_v38 = vadd.f32 %v507_v34, %v1493_v31  ;;  %v819_v33 = vld [vmem:[%s1721_s5 + $0xc0] sm:$0xff]  ;;  %v805_v34 = vld [vmem:[%s1721_s5 + $0x50] sm:$0xff] }
 0x8ac   :  { %v510_v16 = vmax.f32 %v508_v35, 0.0  ;;  %v511_v39 = vmax.f32 %v509_v38, 0.0  ;;  %v820_v35 = vld [vmem:[%s1721_s5 + $0xc8] sm:$0xff]  ;;  %v806_v38 = vld [vmem:[%s1721_s5 + $0x58] sm:$0xff] }
 0x8ae   :  { %542 = vmatprep.subr.mxu1 %v511_v39  ;;  %v807_v39 = vld [vmem:[%s1721_s5 + $0x60] sm:$0xff] }
 0x8af   :  { %543 = vmatpush1.msra.mxu1 %v510_v16  ;;  %v821_v16 = vld [vmem:[%s1721_s5 + $0xd0] sm:$0xff] }
 0x8b0   :  { %1106 = vmatmul.mubr.msk.f32.vlgmr.msra.gmra.mxu1 %vm39_vm2, %v1500_v36 }
 0x8b1   :  { %1291 = vmatprep.mubr.f32.mxu1 %v809_v56 }
 0x970   :  { %v578_v31 = vpop.f32.mrf.mxu1 }
 0x971   :  { %v579_v41 = vadd.f32 %v578_v31, %v1505_v37  ;;  %v823_v31 = vld [vmem:[%s1721_s5 + $0xe0] sm:$0xff] }
 0x972   :  { %v580_v43 = vpop.f32.mrf.mxu1 }
 0x973   :  { %v583_v42 = vadd.f32 %v579_v41, %v1454_v0  ;;  %v581_v36 = vadd.f32 %v580_v43, %v1505_v37  ;;  %v824_v41 = vld [vmem:[%s1721_s5 + $0xe8] sm:$0xff]  ;;  %v826_v43 = vld [vmem:[%s1721_s5 + $0xf8] sm:$0xff] }
 0x975   :  { %588 = vrot.lane.b32.xlu0 %v583_v42, %s1406_s8  ;;  %586 = vrot.lane.b32.xlu1 %v583_v42, %s1407_s9  ;;  %v584_v44 = vadd.f32 %v581_v36, %v1459_v1 }
 0x976   :  { %1214 = vmatprep.mubr.msk.f32.mxu0 %vm617_vm3, %v583_v42 }
 0x979   :  { %590 = vrot.lane.b32.xlu0 %v583_v42, %s1408_s4  ;;  %596 = vrot.lane.b32.xlu1 %v583_v42, %s1409_s10 }
 0x97d   :  { %592 = vrot.lane.b32.xlu0 %v583_v42, %s1410_s11  ;;  %601 = vrot.lane.b32.xlu1 %v584_v44, %s1407_s9 }
 0x981   :  { %594 = vrot.lane.b32.xlu0 %v583_v42, %s1411_s12  ;;  %605 = vrot.lane.b32.xlu1 %v584_v44, %s1408_s4 }
 0x985   :  { %598 = vrot.lane.b32.xlu0 %v583_v42, %s1412_s13  ;;  %609 = vrot.lane.b32.xlu1 %v584_v44, %s1411_s12  ;;  %v825_v42 = vld [vmem:[%s1721_s5 + $0xf0] sm:$0xff]  ;;  %s1413_s5 = smov [#allocation2]  }
 0x986   :  { %s1090_s20 = sshll.u32 %s1413_s5, 4  ;;  %s1091_s20 = int_to_ptr.vmem [resolvable:$true] %s1090_s20 }
 0x987   :  { %s1378_s21 = scalar_lea.vmem %s1091_s20, 4096  ;;  %p1383_p1 = scmp.lt.s32.totalorder %s1091_s20, %s1091_s20 }
 0x988   :  { %p1379_p0 = scmp.ne.s32.totalorder %s1091_s20, %s1378_s21  ;;  %p1384_p2 = scmp.lt.s32.totalorder %s1378_s21, %s1378_s21 }
 0x989   :  { %603 = vrot.lane.b32.xlu0 %v584_v44, %s1406_s8  ;;  %613 = vrot.lane.b32.xlu1 %v584_v44, %s1412_s13 }
 0x98a   :  { %p1385_p3 = por %p1384_p2, %p1383_p1 }
 0x98c   :  { %p1386_p4 = pnand %p1385_p3, %p1379_p0 }
 0x98d   :  { %607 = vrot.lane.b32.xlu0 %v584_v44, %s1410_s11 }
 0x991   :  { %611 = vrot.lane.b32.xlu0 %v584_v44, %s1409_s10 }
 0x9e7   :  { %v589_v0 = vpop.permute.xlu0 %588  ;;  %v587_v37 = vpop.permute.xlu1 %586 }
 0x9e8   :  { %1215 = vmatmul.mubr.msk.f32.vlgmr.msra.gmra.mxu0 %vm617_vm3, %v587_v37 }
 0x9e9   :  { %1217 = vmatprep.mubr.msk.f32.mxu0 %vm617_vm3, %v589_v0 }
 0x9eb   :  { %v591_v1 = vpop.permute.xlu0 %590  ;;  %v597_v45 = vpop.permute.xlu1 %596 }
 0x9ec   :  { %1218 = vmatmul.mubr.msk.f32.gmra.mxu0 %vm617_vm3, %v591_v1 }
 0x9ef   :  { %v593_v46 = vpop.permute.xlu0 %592  ;;  %v602_v48 = vpop.permute.xlu1 %601 }
 0x9f0   :  { %1220 = vmatprep.mubr.msk.f32.mxu0 %vm617_vm3, %v593_v46 }
 0x9f3   :  { %v595_v47 = vpop.permute.xlu0 %594  ;;  %v606_v50 = vpop.permute.xlu1 %605 }
 0x9f4   :  { %1221 = vmatmul.mubr.msk.f32.gmra.mxu0 %vm617_vm3, %v595_v47 }
 0x9f5   :  { %1223 = vmatprep.mubr.msk.f32.mxu0 %vm617_vm3, %v597_v45 }
 0x9f7   :  { %v599_v49 = vpop.permute.xlu0 %598  ;;  %v610_v53 = vpop.permute.xlu1 %609 }
 0x9f8   :  { %1224 = vmatmul.mubr.msk.f32.gmra.mxu0 %vm617_vm3, %v599_v49 }
 0x9f9   :  { %1226 = vmatprep.mubr.msk.f32.mxu0 %vm617_vm3, %v584_v44 }
 0x9fb   :  { %v604_v51 = vpop.permute.xlu0 %603  ;;  %v614_v55 = vpop.permute.xlu1 %613 }
 0x9fc   :  { %1227 = vmatmul.mubr.msk.f32.gmra.mxu0 %vm617_vm3, %v602_v48 }
 0x9fd   :  { %1229 = vmatprep.mubr.msk.f32.mxu0 %vm617_vm3, %v604_v51 }
 0x9ff   :  { %v608_v52 = vpop.permute.xlu0 %607 }
 0xa00   :  { %1230 = vmatmul.mubr.msk.f32.gmra.mxu0 %vm617_vm3, %v606_v50 }
 0xa01   :  { %1232 = vmatprep.mubr.msk.f32.mxu0 %vm617_vm3, %v608_v52 }
 0xa03   :  { %v612_v54 = vpop.permute.xlu0 %611 }
 0xa04   :  { %1233 = vmatmul.mubr.msk.f32.gmra.mxu0 %vm617_vm3, %v610_v53 }
 0xa05   :  { %1235 = vmatprep.mubr.msk.f32.mxu0 %vm617_vm3, %v612_v54 }
 0xa08   :  { %1236 = vmatmul.mubr.msk.f32.gmra.mxu0 %vm617_vm3, %v614_v55 }
 0xa09   :  { %1270 = vmatprep.mubr.f32.mxu0 %v795_v57 }
 0xaa8   :  { %v1567_v58 = vpop.f32.mrf.mxu0 }
 0xaaa   :  { %v1569_v59 = vpop.f32.mrf.mxu0 }
 0xaac   :  { %v1571_v60 = vpop.f32.mrf.mxu0 }
 0xaae   :  { %v1573_v61 = vpop.f32.mrf.mxu0 }
 0xab4   :  { %v1222_v62 = vpop.f32.mrf.mxu0 }
 0xab6   :  { %v736_v63 = vpop.f32.mrf.mxu0 }
 0xab8   :  { %v1225_v2 = vpop.f32.mrf.mxu0 }
 0xaba   :  { %v746_v3 = vpop.f32.mrf.mxu0 }
 0xabc   :  { %v1228_v4 = vpop.f32.mrf.mxu0 }
 0xabe   :  { %v756_v5 = vpop.f32.mrf.mxu0 }
 0xac0   :  { %v1231_v7 = vpop.f32.mrf.mxu0 }
 0xac2   :  { %v766_v8 = vpop.f32.mrf.mxu0 }
 0xac4   :  { %v1234_v9 = vpop.f32.mrf.mxu0 }
 0xac6   :  { %v776_v11 = vpop.f32.mrf.mxu0 }
 0xac8   :  { %v1237_v12 = vpop.f32.mrf.mxu0 }
 0xac9   :  { %1238 = vmatprep.subr.mxu0 %v1237_v12  ;;  %1318 = vmatprep.subr.mxu1 %v1237_v12 }
 0xaca   :  { %v786_v13 = vpop.f32.mrf.mxu0  ;;  %1239 = vmatpush3.msra.mxu0 %v1237_v12  ;;  %1334 = vmatpush3.msra.mxu1 %v1237_v12 }
 0xacb   :  { %1240 = vmatprep.subr.mxu0 %v786_v13  ;;  %1319 = vmatprep.subr.mxu1 %v786_v13 }
 0xacc   :  { %1241 = vmatpush3.msra.mxu0 %v786_v13  ;;  %1335 = vmatpush3.msra.mxu1 %v786_v13 }
 0xacd   :  { %1242 = vmatprep.subr.mxu0 %v1234_v9  ;;  %1320 = vmatprep.subr.mxu1 %v1234_v9 }
 0xace   :  { %1243 = vmatpush3.msra.mxu0 %v1234_v9  ;;  %1336 = vmatpush3.msra.mxu1 %v1234_v9 }
 0xacf   :  { %1244 = vmatprep.subr.mxu0 %v776_v11  ;;  %1321 = vmatprep.subr.mxu1 %v776_v11 }
 0xad0   :  { %1245 = vmatpush3.msra.mxu0 %v776_v11  ;;  %1337 = vmatpush3.msra.mxu1 %v776_v11 }
 0xad1   :  { %1246 = vmatprep.subr.mxu0 %v1231_v7  ;;  %1322 = vmatprep.subr.mxu1 %v1231_v7 }
 0xad2   :  { %1247 = vmatpush3.msra.mxu0 %v1231_v7  ;;  %1338 = vmatpush3.msra.mxu1 %v1231_v7 }
 0xad3   :  { %1248 = vmatprep.subr.mxu0 %v766_v8  ;;  %1323 = vmatprep.subr.mxu1 %v766_v8 }
 0xad4   :  { %1249 = vmatpush3.msra.mxu0 %v766_v8  ;;  %1339 = vmatpush3.msra.mxu1 %v766_v8 }
 0xad5   :  { %1250 = vmatprep.subr.mxu0 %v1228_v4  ;;  %1324 = vmatprep.subr.mxu1 %v1228_v4 }
 0xad6   :  { %1251 = vmatpush3.msra.mxu0 %v1228_v4  ;;  %1340 = vmatpush3.msra.mxu1 %v1228_v4 }
 0xad7   :  { %1252 = vmatprep.subr.mxu0 %v756_v5  ;;  %1325 = vmatprep.subr.mxu1 %v756_v5 }
 0xad8   :  { %1253 = vmatpush3.msra.mxu0 %v756_v5  ;;  %1341 = vmatpush3.msra.mxu1 %v756_v5 }
 0xad9   :  { %1254 = vmatprep.subr.mxu0 %v1225_v2  ;;  %1326 = vmatprep.subr.mxu1 %v1225_v2 }
 0xada   :  { %1255 = vmatpush3.msra.mxu0 %v1225_v2  ;;  %1342 = vmatpush3.msra.mxu1 %v1225_v2 }
 0xadb   :  { %1256 = vmatprep.subr.mxu0 %v746_v3  ;;  %1327 = vmatprep.subr.mxu1 %v746_v3 }
 0xadc   :  { %1257 = vmatpush3.msra.mxu0 %v746_v3  ;;  %1343 = vmatpush3.msra.mxu1 %v746_v3 }
 0xadd   :  { %1258 = vmatprep.subr.mxu0 %v1222_v62  ;;  %1328 = vmatprep.subr.mxu1 %v1222_v62 }
 0xade   :  { %1259 = vmatpush3.msra.mxu0 %v1222_v62  ;;  %1344 = vmatpush3.msra.mxu1 %v1222_v62 }
 0xadf   :  { %1260 = vmatprep.subr.mxu0 %v736_v63  ;;  %1329 = vmatprep.subr.mxu1 %v736_v63 }
 0xae0   :  { %1261 = vmatpush3.msra.mxu0 %v736_v63  ;;  %1345 = vmatpush3.msra.mxu1 %v736_v63 }
 0xae1   :  { %1262 = vmatprep.subr.mxu0 %v1571_v60  ;;  %1330 = vmatprep.subr.mxu1 %v1571_v60 }
 0xae2   :  { %1263 = vmatpush3.msra.mxu0 %v1571_v60  ;;  %1346 = vmatpush3.msra.mxu1 %v1571_v60 }
 0xae3   :  { %1264 = vmatprep.subr.mxu0 %v1573_v61  ;;  %1331 = vmatprep.subr.mxu1 %v1573_v61 }
 0xae4   :  { %1265 = vmatpush3.msra.mxu0 %v1573_v61  ;;  %1347 = vmatpush3.msra.mxu1 %v1573_v61 }
 0xae5   :  { %1266 = vmatprep.subr.mxu0 %v1567_v58  ;;  %1332 = vmatprep.subr.mxu1 %v1567_v58 }
 0xae6   :  { %1267 = vmatpush3.msra.mxu0 %v1567_v58  ;;  %1348 = vmatpush3.msra.mxu1 %v1567_v58 }
 0xae7   :  { %1268 = vmatprep.subr.mxu0 %v1569_v59  ;;  %1333 = vmatprep.subr.mxu1 %v1569_v59 }
 0xae8   :  { %1269 = vmatpush3.msra.mxu0 %v1569_v59  ;;  %1349 = vmatpush3.msra.mxu1 %v1569_v59 }
 0xae9   :  { %1292 = vmatmul.mubr.f32.vlgmr.msra.gmra.mxu1 %v810_v14  ;;  %1271 = vmatmul.mubr.f32.vlgmr.msra.gmra.mxu0 %v796_v15 }
 0xaea   :  { %1294 = vmatprep.mubr.f32.mxu1 %v811_v17  ;;  %1273 = vmatprep.mubr.f32.mxu0 %v797_v18 }
 0xaed   :  { %1295 = vmatmul.mubr.f32.gmra.mxu1 %v812_v19  ;;  %1274 = vmatmul.mubr.f32.gmra.mxu0 %v798_v6 }
 0xaee   :  { %1297 = vmatprep.mubr.f32.mxu1 %v813_v20  ;;  %1276 = vmatprep.mubr.f32.mxu0 %v799_v22 }
 0xaf1   :  { %1298 = vmatmul.mubr.f32.gmra.mxu1 %v814_v23  ;;  %1277 = vmatmul.mubr.f32.gmra.mxu0 %v800_v24 }
 0xaf2   :  { %1300 = vmatprep.mubr.f32.mxu1 %v815_v25  ;;  %1279 = vmatprep.mubr.f32.mxu0 %v801_v26 }
 0xaf5   :  { %1301 = vmatmul.mubr.f32.gmra.mxu1 %v816_v27  ;;  %1280 = vmatmul.mubr.f32.gmra.mxu0 %v802_v28 }
 0xaf6   :  { %1303 = vmatprep.mubr.f32.mxu1 %v817_v29  ;;  %1282 = vmatprep.mubr.f32.mxu0 %v803_v30 }
 0xaf9   :  { %1304 = vmatmul.mubr.f32.gmra.mxu1 %v818_v10  ;;  %1283 = vmatmul.mubr.f32.gmra.mxu0 %v804_v32 }
 0xafa   :  { %1306 = vmatprep.mubr.f32.mxu1 %v819_v33  ;;  %1285 = vmatprep.mubr.f32.mxu0 %v805_v34 }
 0xafd   :  { %1307 = vmatmul.mubr.f32.gmra.mxu1 %v820_v35  ;;  %1286 = vmatmul.mubr.f32.gmra.mxu0 %v806_v38 }
 0xafe   :  { %1309 = vmatprep.mubr.f32.mxu1 %v821_v16  ;;  %1288 = vmatprep.mubr.f32.mxu0 %v807_v39 }
 0xb01   :  { %1310 = vmatmul.mubr.f32.gmra.mxu1 %v822_v21  ;;  %1289 = vmatmul.mubr.f32.gmra.mxu0 %v808_v40 }
 0xb02   :  { %1312 = vmatprep.mubr.f32.mxu1 %v823_v31 }
 0xb05   :  { %1313 = vmatmul.mubr.f32.gmra.mxu1 %v824_v41 }
 0xb06   :  { %1315 = vmatprep.mubr.f32.mxu1 %v825_v42 }
 0xb09   :  { %1316 = vmatmul.mubr.f32.gmra.mxu1 %v826_v43 }
 0xba9   :  { %v1293_v36 = vpop.f32.mrf.mxu1  ;;  %v1272_v44 = vpop.f32.mrf.mxu0 }
 0xbaa   :  { %1068 = vst.msk [vmem:[#allocation2 + $0x78] sm:$0xff] %vm1052_vm4, %v1293_v36  ;;  %1054 = vst.msk [vmem:[#allocation2 + $0x8] sm:$0xff] %vm1052_vm4, %v1272_v44 }
 0xbab   :  { %v963_v0 = vpop.f32.mrf.mxu1  ;;  %v893_v37 = vpop.f32.mrf.mxu0 }
 0xbac   :  { %1067 = vst.msk [vmem:[#allocation2 + $0x70] sm:$0xff] %vm1052_vm4, %v963_v0  ;;  %1053 = vst.msk [vmem:[#allocation2] sm:$0xff] %vm1052_vm4, %v893_v37 }
 0xbad   :  { %v1296_v1 = vpop.f32.mrf.mxu1  ;;  %v1275_v45 = vpop.f32.mrf.mxu0 }
 0xbae   :  { %1070 = vst.msk [vmem:[#allocation2 + $0x88] sm:$0xff] %vm1052_vm4, %v1296_v1  ;;  %1056 = vst.msk [vmem:[#allocation2 + $0x18] sm:$0xff] %vm1052_vm4, %v1275_v45 }
 0xbaf   :  { %v973_v46 = vpop.f32.mrf.mxu1  ;;  %v903_v47 = vpop.f32.mrf.mxu0 }
 0xbb0   :  { %1069 = vst.msk [vmem:[#allocation2 + $0x80] sm:$0xff] %vm1052_vm4, %v973_v46  ;;  %1055 = vst.msk [vmem:[#allocation2 + $0x10] sm:$0xff] %vm1052_vm4, %v903_v47 }
 0xbb1   :  { %v1299_v48 = vpop.f32.mrf.mxu1  ;;  %v1278_v49 = vpop.f32.mrf.mxu0 }
 0xbb2   :  { %1072 = vst.msk [vmem:[#allocation2 + $0x98] sm:$0xff] %vm1052_vm4, %v1299_v48  ;;  %1058 = vst.msk [vmem:[#allocation2 + $0x28] sm:$0xff] %vm1052_vm4, %v1278_v49 }
 0xbb3   :  { %v983_v50 = vpop.f32.mrf.mxu1  ;;  %v913_v51 = vpop.f32.mrf.mxu0 }
 0xbb4   :  { %1071 = vst.msk [vmem:[#allocation2 + $0x90] sm:$0xff] %vm1052_vm4, %v983_v50  ;;  %1057 = vst.msk [vmem:[#allocation2 + $0x20] sm:$0xff] %vm1052_vm4, %v913_v51 }
 0xbb5   :  { %v1302_v52 = vpop.f32.mrf.mxu1  ;;  %v1281_v53 = vpop.f32.mrf.mxu0 }
 0xbb6   :  { %1074 = vst.msk [vmem:[#allocation2 + $0xa8] sm:$0xff] %vm1052_vm4, %v1302_v52  ;;  %1060 = vst.msk [vmem:[#allocation2 + $0x38] sm:$0xff] %vm1052_vm4, %v1281_v53 }
 0xbb7   :  { %v993_v54 = vpop.f32.mrf.mxu1  ;;  %v923_v55 = vpop.f32.mrf.mxu0 }
 0xbb8   :  { %1073 = vst.msk [vmem:[#allocation2 + $0xa0] sm:$0xff] %vm1052_vm4, %v993_v54  ;;  %1059 = vst.msk [vmem:[#allocation2 + $0x30] sm:$0xff] %vm1052_vm4, %v923_v55 }
 0xbb9   :  { %v1305_v56 = vpop.f32.mrf.mxu1  ;;  %v1284_v57 = vpop.f32.mrf.mxu0 }
 0xbba   :  { %1076 = vst.msk [vmem:[#allocation2 + $0xb8] sm:$0xff] %vm1052_vm4, %v1305_v56  ;;  %1062 = vst.msk [vmem:[#allocation2 + $0x48] sm:$0xff] %vm1052_vm4, %v1284_v57 }
 0xbbb   :  { %v1003_v58 = vpop.f32.mrf.mxu1  ;;  %v933_v59 = vpop.f32.mrf.mxu0 }
 0xbbc   :  { %1075 = vst.msk [vmem:[#allocation2 + $0xb0] sm:$0xff] %vm1052_vm4, %v1003_v58  ;;  %1061 = vst.msk [vmem:[#allocation2 + $0x40] sm:$0xff] %vm1052_vm4, %v933_v59 }
 0xbbd   :  { %v1308_v60 = vpop.f32.mrf.mxu1  ;;  %v1287_v61 = vpop.f32.mrf.mxu0 }
 0xbbe   :  { %1078 = vst.msk [vmem:[#allocation2 + $0xc8] sm:$0xff] %vm1052_vm4, %v1308_v60  ;;  %1064 = vst.msk [vmem:[#allocation2 + $0x58] sm:$0xff] %vm1052_vm4, %v1287_v61 }
 0xbbf   :  { %v1013_v62 = vpop.f32.mrf.mxu1  ;;  %v943_v63 = vpop.f32.mrf.mxu0 }
 0xbc0   :  { %1077 = vst.msk [vmem:[#allocation2 + $0xc0] sm:$0xff] %vm1052_vm4, %v1013_v62  ;;  %1063 = vst.msk [vmem:[#allocation2 + $0x50] sm:$0xff] %vm1052_vm4, %v943_v63 }
 0xbc1   :  { %v1311_v2 = vpop.f32.mrf.mxu1  ;;  %v1290_v3 = vpop.f32.mrf.mxu0 }
 0xbc2   :  { %1080 = vst.msk [vmem:[#allocation2 + $0xd8] sm:$0xff] %vm1052_vm4, %v1311_v2  ;;  %1066 = vst.msk [vmem:[#allocation2 + $0x68] sm:$0xff] %vm1052_vm4, %v1290_v3 }
 0xbc3   :  { %v1023_v4 = vpop.f32.mrf.mxu1  ;;  %v953_v5 = vpop.f32.mrf.mxu0 }
 0xbc4   :  { %1079 = vst.msk [vmem:[#allocation2 + $0xd0] sm:$0xff] %vm1052_vm4, %v1023_v4  ;;  %1065 = vst.msk [vmem:[#allocation2 + $0x60] sm:$0xff] %vm1052_vm4, %v953_v5 }
 0xbc5   :  { %v1314_v7 = vpop.f32.mrf.mxu1 }
 0xbc6   :  { %1082 = vst.msk [vmem:[#allocation2 + $0xe8] sm:$0xff] %vm1052_vm4, %v1314_v7 }
 0xbc7   :  { %v1033_v8 = vpop.f32.mrf.mxu1 }
 0xbc8   :  { %1081 = vst.msk [vmem:[#allocation2 + $0xe0] sm:$0xff] %vm1052_vm4, %v1033_v8 }
 0xbc9   :  { %v1317_v9 = vpop.f32.mrf.mxu1 }
 0xbca   :  { %1084 = vst.msk [vmem:[#allocation2 + $0xf8] sm:$0xff] %vm1052_vm4, %v1317_v9 }
 0xbcb   :  { %v1043_v11 = vpop.f32.mrf.mxu1 }
 0xbcc   :  { %1083 = vst.msk [vmem:[#allocation2 + $0xf0] sm:$0xff] %vm1052_vm4, %v1043_v11 }
 0xbcd   :  { %1389 = shalt.err (!%p1386_p4)
}
 0xbce   :  { %s1414_s22 = smov 128   ;;  %s1415_s23 = smov 8  }
 0xbcf   :  { %1096 = dma.vmem_to_hbm [thread:$0]  %s1091_s20, 4096, %s1722_s6, [#allocation3], %s1414_s22, %s1414_s22, %s1415_s23  }
 0xbd0   :  { %1398 = dma.done.wait [#allocation3], 4096  }
 0xbd1   :  { %1399 = vsyncadd [#allocation3], 4294963200 }
 0xbd2   :  { %1100 = vsyncpa [#allocation3], 1 }

</bundles_post_ra>
